<compile_context>
chip_gen: v5e
topology: v5e:2x2
jax: 0.10.0
libtpu: 0.0.40
codegen_flags: <defaults>
</compile_context>

<pallas_src>
import functools

import jax
import jax.numpy as jnp
import numpy as np
from jax import lax
from jax.experimental import pallas as pl
from jax.experimental.pallas import tpu as pltpu


# -----------------------------------------------------------------------------
# One-time weight lowering (setup path, NOT in the per-call hot path).
# -----------------------------------------------------------------------------
def _lower_conv3x3(w, w_in, w_out, stride, out_scale=None):
    """w: (3, 3, Ci, Co) -> (3*w_in*Ci, w_out*Co).

    Folds the 3 dx taps, the W-direction zero padding and the W stride into a dense
    matrix so a whole 3x3 conv becomes ONE MXU matmul with K = 3*w_in*Ci.  The K blocks
    are ordered dy = 0, 1, 2 to match the kernel's [row-above | row | row-below] lane
    concatenation.  `out_scale` (Co,) optionally folds a following per-channel BN scale
    into the output columns."""
    ci, co = int(w.shape[2]), int(w.shape[3])
    w = w.astype(jnp.float32)
    if out_scale is not None:
        w = w * out_scale.astype(jnp.float32).reshape(1, 1, 1, co)
    p = jnp.arange(w_in)[:, None]        # input column index
    jo = jnp.arange(w_out)[None, :]      # output column index
    mats = []
    for dy in range(3):
        b = jnp.zeros((w_in, ci, w_out, co), jnp.float32)
        for dx in range(3):
            # out[jo] += w[dy, dx] * in[jo*stride + dx - 1]  (pad=1; OOB never matches)
            mask = (p == jo * stride + dx - 1).astype(jnp.float32)
            b = b + mask[:, None, :, None] * w[dy, dx][None, :, None, :]
        mats.append(b.reshape(w_in * ci, w_out * co))
    return jnp.concatenate(mats, axis=0)     # (3*w_in*ci, w_out*co)


def _lower_conv1x1(wsc, w_in, w_out, stride):
    """wsc: (Ci, Co) -> (w_in*Ci, w_out*Co) for the strided 1x1 shortcut conv."""
    ci, co = int(wsc.shape[0]), int(wsc.shape[1])
    mask = (jnp.arange(w_in)[:, None] == jnp.arange(w_out)[None, :] * stride)
    return (mask.astype(jnp.float32)[:, None, :, None]
            * wsc.astype(jnp.float32)[None, :, None, :]).reshape(w_in * ci, w_out * co)


def _tile_cb(v, reps):
    """Per-channel scale/bias tiled along W to match the packed (w*C + c) lane layout."""
    return jnp.tile(v.astype(jnp.float32), reps).reshape(1, -1)


def _nbytes(shape, dtype):
    n = 1
    for d in shape:
        n *= int(d)
    return n * jnp.dtype(dtype).itemsize


def _num_tensorcores():
    """Best-effort TensorCore count (used only to decide whether splitting the grid is
    worthwhile).  Falls back to 1, which never hurts correctness."""
    fn = getattr(pltpu, "get_tpu_info", None)
    if fn is None:
        return 1
    try:
        info = fn()
    except Exception:
        return 1
    for attr in ("num_cores", "cores_per_chip", "tensorcores_per_chip",
                 "num_tensor_cores", "core_count"):
        v = getattr(info, attr, None)
        if isinstance(v, int) and v > 0:
            return int(v)
    return 1


@functools.lru_cache(maxsize=None)
def _roll_shift_supported():
    """Probe once whether pltpu.roll along sublanes (jnp.roll semantics) lowers on this
    backend; if not, the kernel falls back to concatenate-based H shifts."""
    def k(x_ref, o_ref):
        r = x_ref.shape[0]
        o_ref[...] = pltpu.roll(x_ref[...], 1, 0) + 2.0 * pltpu.roll(x_ref[...], r - 1, 0)
    try:
        xn = np.arange(32 * 64, dtype=np.float32).reshape(32, 64)
        y = pl.pallas_call(
            k, out_shape=jax.ShapeDtypeStruct((32, 64), jnp.float32))(jnp.asarray(xn))
        want = np.roll(xn, 1, 0) + 2.0 * np.roll(xn, -1, 0)
        return bool(np.allclose(np.asarray(jax.block_until_ready(y)), want))
    except Exception:
        return False


# -----------------------------------------------------------------------------
# Kernel
# -----------------------------------------------------------------------------
def _make_block_kernel(nb, H, W, Cin, Cout, stride, remove_first_relu,
                       add_last_bn, preact, has_sc_conv, use_roll):
    Ho, Wo = H // stride, W // stride
    wc_in, wc_out = W * Cin, Wo * Cout
    R_in, R_out = nb * H, nb * Ho

    def row_sel(dtype):
        # (R_out, R_in) 0/1 matrix selecting input rows i*stride per image; exact
        # decimation via one tiny MXU matmul (well-supported, no strided reshapes).
        ro = lax.broadcasted_iota(jnp.int32, (R_out, R_in), 0)
        ri = lax.broadcasted_iota(jnp.int32, (R_out, R_in), 1)
        return (ri == stride * ro).astype(dtype)

    def build_rows(a2d, h, width):
        """a2d: (nb*h, width) f32 -> (nb*h, 3*width) bf16 whose lanes are
        [row-above | row | row-below] (zeros at each image's top/bottom)."""
        r = nb * h
        if use_roll:
            # XLU sublane rolls (idle unit) + VPU masks; cross-image wrap is masked out.
            row = lax.broadcasted_iota(jnp.int32, (nb, h, width), 1).reshape(r, width)
            down = jnp.where(row == 0, 0.0, pltpu.roll(a2d, 1, 0))
            up = jnp.where(row == h - 1, 0.0, pltpu.roll(a2d, r - 1, 0))
        else:
            a3 = a2d.reshape(nb, h, width)
            z = jnp.zeros((nb, 1, width), a2d.dtype)
            down = jnp.concatenate([z, a3[:, :h - 1]], axis=1).reshape(r, width)
            up = jnp.concatenate([a3[:, 1:], z], axis=1).reshape(r, width)
        return jnp.concatenate([down.astype(jnp.bfloat16),
                                a2d.astype(jnp.bfloat16),
                                up.astype(jnp.bfloat16)], axis=-1)

    def kernel(*refs):
        it = iter(refs)
        x_ref = next(it)                                  # (nb, H, W*Cin)       bf16
        w1_ref = next(it)                                 # (3*W*Cin, Wo*Cout)   bf16 (s2 folded)
        w2_ref = next(it)                                 # (3*Wo*Cout, Wo*Cout) bf16 (s3 folded)
        wsc_ref = next(it) if has_sc_conv else None       # (W*Cin, Wo*Cout)     bf16
        s1_ref, b1_ref = next(it), next(it)               # (1, W*Cin)           f32
        b2_ref = next(it)                                 # (1, Wo*Cout)         f32
        b3_ref = next(it) if add_last_bn else None        # (1, Wo*Cout)         f32
        o_ref = next(it)                                  # (nb, Ho, Wo*Cout)    f32

        # ---- bn1 (+ optional relu), f32 elementwise ----
        x = x_ref[...].astype(jnp.float32).reshape(R_in, wc_in)
        a1 = x * s1_ref[...] + b1_ref[...]
        if preact or (not remove_first_relu):
            a1 = jnp.maximum(a1, 0.0)

        # ---- conv1: 3x3, stride, pad=1 -> one MXU matmul, K = 3*W*Cin ----
        rows1 = build_rows(a1, H, wc_in)                  # (R_in, 3*wc_in) bf16
        if stride > 1:                                    # exact H-stride decimation
            rows1 = jnp.dot(row_sel(jnp.bfloat16), rows1,
                            preferred_element_type=jnp.float32).astype(jnp.bfloat16)
        acc1 = jnp.dot(rows1, w1_ref[...], preferred_element_type=jnp.float32)

        # ---- bn2 bias (scale pre-folded into w1) + relu ----
        a2 = jnp.maximum(acc1 + b2_ref[...], 0.0)         # (R_out, wc_out) f32

        # ---- conv2: 3x3, stride 1, pad=1 -> one MXU matmul, K = 3*Wo*Cout ----
        acc2 = jnp.dot(build_rows(a2, Ho, wc_out), w2_ref[...],
                       preferred_element_type=jnp.float32)
        if add_last_bn:                                   # bn3 scale pre-folded into w2
            acc2 = acc2 + b3_ref[...]

        # ---- shortcut ----
        sc_src = a1 if preact else x                      # (R_in, wc_in) f32
        if has_sc_conv:
            sc_rows = sc_src.astype(jnp.bfloat16)
            if stride > 1:
                sc_rows = jnp.dot(row_sel(jnp.bfloat16), sc_rows,
                                  preferred_element_type=jnp.float32).astype(jnp.bfloat16)
            sc = jnp.dot(sc_rows, wsc_ref[...], preferred_element_type=jnp.float32)
        else:
            sc = sc_src                                   # identity: wc_in == wc_out, stride == 1

        # lane-dense (Wo*Cout wide) writeback
        o_ref[...] = (acc2 + sc).reshape(nb, Ho, wc_out)

    return kernel


# -----------------------------------------------------------------------------
# Module wrapper: lowering/packing once at construction; jitted forward.
# -----------------------------------------------------------------------------
class BasicBlockTPU:
    """Fused eval-mode BasicBlock.  Weight lowering / BN folding happens ONCE here;
    __call__ is a jitted (NCHW -> packed -> pallas_call -> packed -> NCHW) forward."""

    def __init__(self, w1, w2, wsc, s1, b1, s2, b2, s3, b3, *, stride,
                 remove_first_relu, add_last_bn, preact, image_hw):
        H, W = image_hw
        Cin, Cout = int(w1.shape[2]), int(w1.shape[3])
        assert H % stride == 0 and W % stride == 0, "H, W must be divisible by stride"
        Ho, Wo = H // stride, W // stride
        has_sc_conv = (Cin != Cout)
        if not has_sc_conv:
            # PyTorch's BasicBlock uses an identity shortcut whenever Cin == Cout,
            # which only shape-checks for stride == 1.
            assert stride == 1, "identity shortcut requires stride == 1"

        self.cfg = dict(H=H, W=W, Cin=Cin, Cout=Cout, Ho=Ho, Wo=Wo, stride=stride,
                        remove_first_relu=remove_first_relu, add_last_bn=add_last_bn,
                        preact=preact, has_sc_conv=has_sc_conv)

        # ---- one-time lowering; bn2 / bn3 scales folded into conv output columns ----
        self.w1_l = _lower_conv3x3(w1, W, Wo, stride, out_scale=s2).astype(jnp.bfloat16)
        self.w2_l = _lower_conv3x3(
            w2, Wo, Wo, 1, out_scale=(s3 if add_last_bn else None)).astype(jnp.bfloat16)
        self.wsc_l = (_lower_conv1x1(wsc, W, Wo, stride).astype(jnp.bfloat16)
                      if has_sc_conv else None)
        self.s1_t = _tile_cb(s1, W)
        self.b1_t = _tile_cb(b1, W)
        self.b2_t = _tile_cb(b2, Wo)
        self.b3_t = _tile_cb(b3, Wo) if add_last_bn else None

        self._num_cores = _num_tensorcores()
        self._use_roll = _roll_shift_supported()

        # jitted entry points (weights are closure constants -> lowered once)
        self.apply_packed = jax.jit(self._packed_impl)   # (N,H,W*Cin) bf16 -> (N,Ho,Wo*Cout) f32
        self._apply_nchw = jax.jit(self._nchw_impl)

    # ---- packed-layout entry point (keep this layout across chained blocks) ----
    def _packed_impl(self, x_p):
        c = self.cfg
        N = x_p.shape[0]
        H, W, Cin, Ho, Wo, Cout = c["H"], c["W"], c["Cin"], c["Ho"], c["Wo"], c["Cout"]
        wc_in, wc_out = W * Cin, Wo * Cout
        has_sc_conv, add_last_bn = c["has_sc_conv"], c["add_last_bn"]

        # One grid step unless splitting still leaves the matmul M dim (nb*Ho) >= 128
        # per step AND there are multiple TensorCores to feed (v7x).  At small batches
        # this keeps a single step: no pipeline overhead, maximal MXU row fill.
        steps = 1
        while (2 * steps <= self._num_cores and N % (2 * steps) == 0
               and (N // (2 * steps)) * Ho >= 128):
            steps *= 2
        nb = N // steps

        args = [x_p, self.w1_l, self.w2_l]
        in_specs = [
            pl.BlockSpec((nb, H, wc_in), lambda n: (n, 0, 0)),
            pl.BlockSpec((3 * wc_in, wc_out), lambda n: (0, 0)),
            pl.BlockSpec((3 * wc_out, wc_out), lambda n: (0, 0)),
        ]
        if has_sc_conv:
            args.append(self.wsc_l)
            in_specs.append(pl.BlockSpec((wc_in, wc_out), lambda n: (0, 0)))
        args += [self.s1_t, self.b1_t, self.b2_t]
        in_specs += [pl.BlockSpec((1, wc_in), lambda n: (0, 0))] * 2
        in_specs += [pl.BlockSpec((1, wc_out), lambda n: (0, 0))]
        if add_last_bn:
            args.append(self.b3_t)
            in_specs.append(pl.BlockSpec((1, wc_out), lambda n: (0, 0)))

        kernel = _make_block_kernel(nb, H, W, Cin, Cout, c["stride"],
                                    c["remove_first_relu"], add_last_bn,
                                    c["preact"], has_sc_conv, self._use_roll)

        # Explicit VMEM budget (double-buffered operands + working-set slack),
        # capped at the v7x-safe scoped default.
        vmem_need = 2 * (_nbytes((nb, H, wc_in), jnp.bfloat16)
                         + _nbytes((3 * wc_in, wc_out), jnp.bfloat16)
                         + _nbytes((3 * wc_out, wc_out), jnp.bfloat16)
                         + int(has_sc_conv) * _nbytes((wc_in, wc_out), jnp.bfloat16)
                         + 2 * _nbytes((1, wc_in), jnp.float32)
                         + (1 + int(add_last_bn)) * _nbytes((1, wc_out), jnp.float32)
                         + _nbytes((nb, Ho, wc_out), jnp.float32))
        vmem_need += 8 * _nbytes((nb * H, 3 * max(wc_in, wc_out)), jnp.float32)
        vmem_limit = int(min(max(vmem_need, 8 << 20), 32 << 20))

        return pl.pallas_call(
            kernel,
            out_shape=jax.ShapeDtypeStruct((N, Ho, wc_out), jnp.float32),
            grid=(steps,),
            in_specs=in_specs,
            out_specs=pl.BlockSpec((nb, Ho, wc_out), lambda n: (n, 0, 0)),
            compiler_params=pltpu.CompilerParams(
                dimension_semantics=("parallel",),
                vmem_limit_bytes=vmem_limit),
        )(*args)

    def _nchw_impl(self, x_nchw):
        c = self.cfg
        N = x_nchw.shape[0]
        x_p = jnp.transpose(x_nchw, (0, 2, 3, 1)).reshape(
            N, c["H"], c["W"] * c["Cin"]).astype(jnp.bfloat16)
        out_p = self._packed_impl(x_p)
        out = out_p.reshape(N, c["Ho"], c["Wo"], c["Cout"])
        return jnp.transpose(out, (0, 3, 1, 2))

    def __call__(self, x_nchw):
        return self._apply_nchw(x_nchw)


# -----------------------------------------------------------------------------
# Plain-JAX f32 reference (mirrors the PyTorch forward, eval-mode BN)
# -----------------------------------------------------------------------------
def basic_block_reference(x_nchw, w1, w2, wsc, s1, b1, s2, b2, s3, b3, *,
                          stride, remove_first_relu, add_last_bn, preact):
    x = jnp.transpose(x_nchw, (0, 2, 3, 1)).astype(jnp.float32)
    Cin, Cout = w1.shape[2], w1.shape[3]
    dn = ('NHWC', 'HWIO', 'NHWC')
    bn = lambda t, s, b: t * s.reshape(1, 1, 1, -1) + b.reshape(1, 1, 1, -1)

    a1 = bn(x, s1, b1)
    if preact or (not remove_first_relu):
        a1 = jnp.maximum(a1, 0.0)
    y = lax.conv_general_dilated(a1, w1, (stride, stride), ((1, 1), (1, 1)),
                                 dimension_numbers=dn)
    y = jnp.maximum(bn(y, s2, b2), 0.0)
    y = lax.conv_general_dilated(y, w2, (1, 1), ((1, 1), (1, 1)),
                                 dimension_numbers=dn)
    if add_last_bn:
        y = bn(y, s3, b3)
    sc_in = a1 if preact else x
    if Cin != Cout:
        sc = lax.conv_general_dilated(sc_in, wsc.reshape(1, 1, Cin, Cout),
                                      (stride, stride), ((0, 0), (0, 0)),
                                      dimension_numbers=dn)
    else:
        sc = sc_in
    return jnp.transpose(y + sc, (0, 3, 1, 2))


def _bn_scale_bias(kg, kb, km, kv, C, eps=1e-5):
    gamma = 1.0 + 0.1 * jax.random.normal(kg, (C,), jnp.float32)
    beta = 0.1 * jax.random.normal(kb, (C,), jnp.float32)
    mean = 0.1 * jax.random.normal(km, (C,), jnp.float32)
    var = jnp.abs(1.0 + 0.1 * jax.random.normal(kv, (C,), jnp.float32))
    scale = gamma / jnp.sqrt(var + eps)
    return scale, beta - mean * scale


def _run_and_check(cfg_idx, N, Cin, Cout, H, W, *, stride, remove_first_relu,
                   add_last_bn, preact):
    keys = jax.random.split(jax.random.fold_in(jax.random.PRNGKey(0), cfg_idx), 16)
    x = jax.random.normal(keys[0], (N, Cin, H, W), jnp.float32)
    w1 = 0.1 * jax.random.normal(keys[1], (3, 3, Cin, Cout), jnp.float32)
    w2 = 0.1 * jax.random.normal(keys[2], (3, 3, Cout, Cout), jnp.float32)
    wsc = 0.1 * jax.random.normal(keys[3], (Cin, Cout), jnp.float32)
    s1, b1 = _bn_scale_bias(keys[4], keys[5], keys[6], keys[7], Cin)
    s2, b2 = _bn_scale_bias(keys[8], keys[9], keys[10], keys[11], Cout)
    s3, b3 = _bn_scale_bias(keys[12], keys[13], keys[14], keys[15], Cout)
    cfg = dict(stride=stride, remove_first_relu=remove_first_relu,
               add_last_bn=add_last_bn, preact=preact)

    block = BasicBlockTPU(w1, w2, wsc, s1, b1, s2, b2, s3, b3,
                          image_hw=(H, W), **cfg)
    out = jax.block_until_ready(block(x))
    ref = basic_block_reference(x, w1, w2, wsc, s1, b1, s2, b2, s3, b3, **cfg)
    # Kernel uses bf16 conv operands (f32 accumulation); reference is all-f32.
    np.testing.assert_allclose(np.asarray(out), np.asarray(ref), rtol=4e-2, atol=4e-2)


if __name__ == "__main__":
    # BasicBlock(4 -> 8, stride 1, add_last_bn=True, preact=False): projection shortcut + bn3.
    _run_and_check(0, 2, 4, 8, 16, 16,
                   stride=1, remove_first_relu=False, add_last_bn=True, preact=False)
    # BasicBlock(8 -> 8, stride 1, preact=True): identity shortcut, no bn3
    # (exercises the conditional-operand paths).
    _run_and_check(1, 2, 8, 8, 16, 16,
                   stride=1, remove_first_relu=True, add_last_bn=False, preact=True)
    # BasicBlock(4 -> 8, stride 2): validates the strided conv / shortcut decimation path.
    _run_and_check(2, 2, 4, 8, 16, 16,
                   stride=2, remove_first_relu=False, add_last_bn=False, preact=False)
    print("KERNEL_OK")
</pallas_src>

<mosaic_0001>
module attributes {stable_mosaic.version = 11 : i64} {
  func.func @k(%arg0: memref<32x64xf32, #tpu.memory_space<vmem>>, %arg1: memref<32x64xf32, #tpu.memory_space<vmem>>) attributes {dimension_semantics = [], scalar_prefetch = 0 : i64, scratch_operands = 0 : i64, tpu.core_type = #tpu.core_type<tc>} {
    %c0 = arith.constant 0 : index
    %c0_0 = arith.constant 0 : index
    %0 = vector.load %arg0[%c0, %c0_0] : memref<32x64xf32, #tpu.memory_space<vmem>>, vector<32x64xf32>
    %c1_i32 = arith.constant 1 : i32
    %1 = tpu.dynamic_rotate %0 by %c1_i32 dim 0 : vector<32x64xf32>, i32 -> vector<32x64xf32>
    %c0_1 = arith.constant 0 : index
    %c0_2 = arith.constant 0 : index
    %2 = vector.load %arg0[%c0_1, %c0_2] : memref<32x64xf32, #tpu.memory_space<vmem>>, vector<32x64xf32>
    %c31_i32 = arith.constant 31 : i32
    %3 = tpu.dynamic_rotate %2 by %c31_i32 dim 0 : vector<32x64xf32>, i32 -> vector<32x64xf32>
    %cst = arith.constant 2.000000e+00 : f32
    %4 = vector.broadcast %cst : f32 to vector<32x64xf32>
    %5 = arith.mulf %4, %3 : vector<32x64xf32>
    %6 = arith.addf %1, %5 : vector<32x64xf32>
    %c0_3 = arith.constant 0 : index
    %c0_4 = arith.constant 0 : index
    %7 = vector.load %arg1[%c0_3, %c0_4] : memref<32x64xf32, #tpu.memory_space<vmem>>, vector<32x64xf32>
    tpu.vector_store %arg1[%c0_3, %c0_4], %6 {strides = array<i32>} : memref<32x64xf32, #tpu.memory_space<vmem>>, vector<32x64xf32>,
    return
  }
}

module attributes {stable_mosaic.version = 11 : i64} {
  func.func @kernel(%arg0: i32, %arg1: memref<2x16x64xbf16, #tpu.memory_space<vmem>>, %arg2: memref<192x128xbf16, #tpu.memory_space<vmem>>, %arg3: memref<384x128xbf16, #tpu.memory_space<vmem>>, %arg4: memref<64x128xbf16, #tpu.memory_space<vmem>>, %arg5: memref<1x64xf32, #tpu.memory_space<vmem>>, %arg6: memref<1x64xf32, #tpu.memory_space<vmem>>, %arg7: memref<1x128xf32, #tpu.memory_space<vmem>>, %arg8: memref<1x128xf32, #tpu.memory_space<vmem>>, %arg9: memref<2x16x128xf32, #tpu.memory_space<vmem>>) attributes {dimension_semantics = [#tpu.dimension_semantics<parallel>], iteration_bounds = array<i64: 1>, scalar_prefetch = 0 : i64, scratch_operands = 0 : i64, tpu.core_type = #tpu.core_type<tc>, window_params = [{transform_indices = @transform_0, window_bounds = array<i64: 2, 16, 64>}, {pipeline_mode = #tpu.pipeline_mode<synchronous>, transform_indices = @transform_1, window_bounds = array<i64: 192, 128>}, {pipeline_mode = #tpu.pipeline_mode<synchronous>, transform_indices = @transform_2, window_bounds = array<i64: 384, 128>}, {pipeline_mode = #tpu.pipeline_mode<synchronous>, transform_indices = @transform_3, window_bounds = array<i64: 64, 128>}, {pipeline_mode = #tpu.pipeline_mode<synchronous>, transform_indices = @transform_4, window_bounds = array<i64: 1, 64>}, {pipeline_mode = #tpu.pipeline_mode<synchronous>, transform_indices = @transform_5, window_bounds = array<i64: 1, 64>}, {pipeline_mode = #tpu.pipeline_mode<synchronous>, transform_indices = @transform_6, window_bounds = array<i64: 1, 128>}, {pipeline_mode = #tpu.pipeline_mode<synchronous>, transform_indices = @transform_7, window_bounds = array<i64: 1, 128>}, {transform_indices = @transform_8, window_bounds = array<i64: 2, 16, 128>}]} {
    %c0 = arith.constant 0 : index
    %c0_0 = arith.constant 0 : index
    %c0_1 = arith.constant 0 : index
    %0 = vector.load %arg1[%c0, %c0_0, %c0_1] : memref<2x16x64xbf16, #tpu.memory_space<vmem>>, vector<2x16x64xbf16>
    %1 = arith.extf %0 : vector<2x16x64xbf16> to vector<2x16x64xf32>
    %2 = vector.shape_cast %1 : vector<2x16x64xf32> to vector<32x64xf32>
    %c0_2 = arith.constant 0 : index
    %c0_3 = arith.constant 0 : index
    %3 = vector.load %arg5[%c0_2, %c0_3] : memref<1x64xf32, #tpu.memory_space<vmem>>, vector<1x64xf32>
    %4 = vector.broadcast %3 : vector<1x64xf32> to vector<32x64xf32>
    %5 = arith.mulf %2, %4 : vector<32x64xf32>
    %c0_4 = arith.constant 0 : index
    %c0_5 = arith.constant 0 : index
    %6 = vector.load %arg6[%c0_4, %c0_5] : memref<1x64xf32, #tpu.memory_space<vmem>>, vector<1x64xf32>
    %7 = vector.broadcast %6 : vector<1x64xf32> to vector<32x64xf32>
    %8 = arith.addf %5, %7 : vector<32x64xf32>
    %cst = arith.constant 0.000000e+00 : f32
    %9 = vector.broadcast %cst : f32 to vector<32x64xf32>
    %10 = arith.maximumf %8, %9 : vector<32x64xf32>
    %11 = vector.shape_cast %10 : vector<32x64xf32> to vector<2x16x64xf32>
    %cst_6 = arith.constant 0.000000e+00 : f32
    %12 = vector.broadcast %cst_6 : f32 to vector<2x1x64xf32>
    %13 = vector.extract_strided_slice %11 {offsets = [0, 0, 0], sizes = [2, 15, 64], strides = [1, 1, 1]} : vector<2x16x64xf32> to vector<2x15x64xf32>
    %14 = tpu.concatenate %12, %13 in 1 : vector<2x1x64xf32>, vector<2x15x64xf32> -> vector<2x16x64xf32>
    %15 = vector.shape_cast %14 : vector<2x16x64xf32> to vector<32x64xf32>
    %16 = vector.extract_strided_slice %11 {offsets = [0, 1, 0], sizes = [2, 15, 64], strides = [1, 1, 1]} : vector<2x16x64xf32> to vector<2x15x64xf32>
    %17 = tpu.concatenate %16, %12 in 1 : vector<2x15x64xf32>, vector<2x1x64xf32> -> vector<2x16x64xf32>
    %18 = vector.shape_cast %17 : vector<2x16x64xf32> to vector<32x64xf32>
    %19 = arith.truncf %15 : vector<32x64xf32> to vector<32x64xbf16>
    %20 = arith.truncf %10 : vector<32x64xf32> to vector<32x64xbf16>
    %21 = arith.truncf %18 : vector<32x64xf32> to vector<32x64xbf16>
    %22 = tpu.concatenate %19, %20, %21 in 1 : vector<32x64xbf16>, vector<32x64xbf16>, vector<32x64xbf16> -> vector<32x192xbf16>
    %c0_7 = arith.constant 0 : index
    %c0_8 = arith.constant 0 : index
    %23 = vector.load %arg2[%c0_7, %c0_8] : memref<192x128xbf16, #tpu.memory_space<vmem>>, vector<192x128xbf16>
    %cst_9 = arith.constant dense<0.000000e+00> : vector<32x128xf32>
    %24 = tpu.matmul %22, %23, %cst_9 {dimension_numbers = #tpu.dot_dimension_numbers<[1], [0], [0], [1], [0, 0, 1, 1], [], []>} : vector<32x192xbf16>, vector<192x128xbf16>, vector<32x128xf32> -> vector<32x128xf32>
    %c0_10 = arith.constant 0 : index
    %c0_11 = arith.constant 0 : index
    %25 = vector.load %arg7[%c0_10, %c0_11] : memref<1x128xf32, #tpu.memory_space<vmem>>, vector<1x128xf32>
    %26 = vector.broadcast %25 : vector<1x128xf32> to vector<32x128xf32>
    %27 = arith.addf %24, %26 : vector<32x128xf32>
    %cst_12 = arith.constant 0.000000e+00 : f32
    %28 = vector.broadcast %cst_12 : f32 to vector<32x128xf32>
    %29 = arith.maximumf %27, %28 : vector<32x128xf32>
    %30 = vector.shape_cast %29 : vector<32x128xf32> to vector<2x16x128xf32>
    %cst_13 = arith.constant 0.000000e+00 : f32
    %31 = vector.broadcast %cst_13 : f32 to vector<2x1x128xf32>
    %32 = vector.extract_strided_slice %30 {offsets = [0, 0, 0], sizes = [2, 15, 128], strides = [1, 1, 1]} : vector<2x16x128xf32> to vector<2x15x128xf32>
    %33 = tpu.concatenate %31, %32 in 1 : vector<2x1x128xf32>, vector<2x15x128xf32> -> vector<2x16x128xf32>
    %34 = vector.shape_cast %33 : vector<2x16x128xf32> to vector<32x128xf32>
    %35 = vector.extract_strided_slice %30 {offsets = [0, 1, 0], sizes = [2, 15, 128], strides = [1, 1, 1]} : vector<2x16x128xf32> to vector<2x15x128xf32>
    %36 = tpu.concatenate %35, %31 in 1 : vector<2x15x128xf32>, vector<2x1x128xf32> -> vector<2x16x128xf32>
    %37 = vector.shape_cast %36 : vector<2x16x128xf32> to vector<32x128xf32>
    %38 = arith.truncf %34 : vector<32x128xf32> to vector<32x128xbf16>
    %39 = arith.truncf %29 : vector<32x128xf32> to vector<32x128xbf16>
    %40 = arith.truncf %37 : vector<32x128xf32> to vector<32x128xbf16>
    %41 = tpu.concatenate %38, %39, %40 in 1 : vector<32x128xbf16>, vector<32x128xbf16>, vector<32x128xbf16> -> vector<32x384xbf16>
    %c0_14 = arith.constant 0 : index
    %c0_15 = arith.constant 0 : index
    %42 = vector.load %arg3[%c0_14, %c0_15] : memref<384x128xbf16, #tpu.memory_space<vmem>>, vector<384x128xbf16>
    %cst_16 = arith.constant dense<0.000000e+00> : vector<32x128xf32>
    %43 = tpu.matmul %41, %42, %cst_16 {dimension_numbers = #tpu.dot_dimension_numbers<[1], [0], [0], [1], [0, 0, 1, 1], [], []>} : vector<32x384xbf16>, vector<384x128xbf16>, vector<32x128xf32> -> vector<32x128xf32>
    %c0_17 = arith.constant 0 : index
    %c0_18 = arith.constant 0 : index
    %44 = vector.load %arg8[%c0_17, %c0_18] : memref<1x128xf32, #tpu.memory_space<vmem>>, vector<1x128xf32>
    %45 = vector.broadcast %44 : vector<1x128xf32> to vector<32x128xf32>
    %46 = arith.addf %43, %45 : vector<32x128xf32>
    %47 = arith.truncf %2 : vector<32x64xf32> to vector<32x64xbf16>
    %c0_19 = arith.constant 0 : index
    %c0_20 = arith.constant 0 : index
    %48 = vector.load %arg4[%c0_19, %c0_20] : memref<64x128xbf16, #tpu.memory_space<vmem>>, vector<64x128xbf16>
    %cst_21 = arith.constant dense<0.000000e+00> : vector<32x128xf32>
    %49 = tpu.matmul %47, %48, %cst_21 {dimension_numbers = #tpu.dot_dimension_numbers<[1], [0], [0], [1], [0, 0, 1, 1], [], []>} : vector<32x64xbf16>, vector<64x128xbf16>, vector<32x128xf32> -> vector<32x128xf32>
    %50 = arith.addf %46, %49 : vector<32x128xf32>
    %51 = vector.shape_cast %50 : vector<32x128xf32> to vector<2x16x128xf32>
    %c0_22 = arith.constant 0 : index
    %c0_23 = arith.constant 0 : index
    %c0_24 = arith.constant 0 : index
    %52 = vector.load %arg9[%c0_22, %c0_23, %c0_24] : memref<2x16x128xf32, #tpu.memory_space<vmem>>, vector<2x16x128xf32>
    tpu.vector_store %arg9[%c0_22, %c0_23, %c0_24], %51 {strides = array<i32>} : memref<2x16x128xf32, #tpu.memory_space<vmem>>, vector<2x16x128xf32>,
    return
  }
  func.func @transform_0(%arg0: i32) -> (i32, i32, i32) {
    %c0_i32 = arith.constant 0 : i32
    %c0_i32_0 = arith.constant 0 : i32
    %c0_i32_1 = arith.constant 0 : i32
    return %arg0, %c0_i32, %c0_i32_0 : i32, i32, i32
  }
  func.func @transform_1(%arg0: i32) -> (i32, i32) {
    %c0_i32 = arith.constant 0 : i32
    %c0_i32_0 = arith.constant 0 : i32
    %c0_i32_1 = arith.constant 0 : i32
    return %c0_i32, %c0_i32_0 : i32, i32
  }
  func.func @transform_2(%arg0: i32) -> (i32, i32) {
    %c0_i32 = arith.constant 0 : i32
    %c0_i32_0 = arith.constant 0 : i32
    %c0_i32_1 = arith.constant 0 : i32
    return %c0_i32, %c0_i32_0 : i32, i32
  }
  func.func @transform_3(%arg0: i32) -> (i32, i32) {
    %c0_i32 = arith.constant 0 : i32
    %c0_i32_0 = arith.constant 0 : i32
    %c0_i32_1 = arith.constant 0 : i32
    return %c0_i32, %c0_i32_0 : i32, i32
  }
  func.func @transform_4(%arg0: i32) -> (i32, i32) {
    %c0_i32 = arith.constant 0 : i32
    %c0_i32_0 = arith.constant 0 : i32
    %c0_i32_1 = arith.constant 0 : i32
    return %c0_i32, %c0_i32_0 : i32, i32
  }
  func.func @transform_5(%arg0: i32) -> (i32, i32) {
    %c0_i32 = arith.constant 0 : i32
    %c0_i32_0 = arith.constant 0 : i32
    %c0_i32_1 = arith.constant 0 : i32
    return %c0_i32, %c0_i32_0 : i32, i32
  }
  func.func @transform_6(%arg0: i32) -> (i32, i32) {
    %c0_i32 = arith.constant 0 : i32
    %c0_i32_0 = arith.constant 0 : i32
    %c0_i32_1 = arith.constant 0 : i32
    return %c0_i32, %c0_i32_0 : i32, i32
  }
  func.func @transform_7(%arg0: i32) -> (i32, i32) {
    %c0_i32 = arith.constant 0 : i32
    %c0_i32_0 = arith.constant 0 : i32
    %c0_i32_1 = arith.constant 0 : i32
    return %c0_i32, %c0_i32_0 : i32, i32
  }
  func.func @transform_8(%arg0: i32) -> (i32, i32, i32) {
    %c0_i32 = arith.constant 0 : i32
    %c0_i32_0 = arith.constant 0 : i32
    %c0_i32_1 = arith.constant 0 : i32
    return %arg0, %c0_i32, %c0_i32_0 : i32, i32, i32
  }
}

</mosaic_0001>

<bundles_post_ra>
// kernel: tpu_custom_call.1
= control target key start
LH: loop header
LB: loop body
LE: loop exit
PB: predicated region body
PF: predicated region fallthrough
CT: control target
= control target key end

     0   :  { %6 = vsyncpa [#allocation3], 0  ;;  %s175_s0 = inlined_call_operand.hbm [shape: f32[32,64], index: 0, kind: input, shape index: {}]   ;;  %s176_s1 = inlined_call_operand.hbm [shape: f32[32,64], index: 1, kind: output, shape index: {}]  }
   0x1   :  { %7 = vsyncpa [#allocation4], 0  ;;  %s12_s8 = sshll.u32 %s175_s0, 4  ;;  %s137_s9 = smov [#allocation2]   ;;  %s13_s8 = int_to_ptr.hbm [resolvable:$true] %s12_s8 }
   0x2   :  { %s14_s10 = sshll.u32 %s137_s9, 4  ;;  %s138_s11 = smov 128   ;;  %s15_s10 = int_to_ptr.vmem [resolvable:$true] %s14_s10 }
   0x3   :  { %s139_s12 = smov 8  }
   0x4   :  { %20 = dma.hbm_to_vmem [thread:$0]  %s13_s8, 512, %s15_s10, [#allocation3], %s138_s11, %s138_s11, %s139_s12  }
   0x5   :  { %133 = dma.done.wait [#allocation3], 512  }
   0x6   :  { %134 = vsyncadd [#allocation3], 4294966784  ;;  %v33_v0 = vlaneseq  ;;  %v25_v2 = vld [vmem:[#allocation2] sm:$0xff]  ;;  %v26_v3 = vld [vmem:[#allocation2 + $0x8] sm:$0xff]  ;;  %vm57_vm2 = vcmask 523264   ;;  %s140_s0 = smov [#allocation5]  }
   0x7   :  { %v28_v4 = vld [vmem:[#allocation2 + $0x18] sm:$0xff]  ;;  %v29_v5 = vrot.slane %v25_v2, 7  ;;  %v40_v7 = vrot.slane %v25_v2, 1  ;;  %v41_v8 = vrot.slane %v26_v3, 1  ;;  %v27_v9 = vld [vmem:[#allocation2 + $0x10] sm:$0xff]  ;;  %v30_v10 = vrot.slane %v26_v3, 7 }
   0x8   :  { %v34_v1 = vshrl.u32 %v33_v0, 7  ;;  %v32_v6 = vrot.slane %v28_v4, 7  ;;  %v42_v11 = vrot.slane %v27_v9, 1  ;;  %v31_v12 = vrot.slane %v27_v9, 7  ;;  %s66_s13 = sshll.u32 %s140_s0, 4  ;;  %s68_s16 = sshll.u32 %s176_s1, 4  ;;  %s67_s13 = int_to_ptr.vmem [resolvable:$true] %s66_s13  ;;  %s69_s16 = int_to_ptr.hbm [resolvable:$true] %s68_s16 }
   0x9   :  { %v43_v13 = vrot.slane %v28_v4, 1 }
   0xa   :  { %vm35_vm0 = vcmp.lt.s32.totalorder %v34_v1, 1  ;;  %vm44_vm1 = vcmp.lt.s32.totalorder %v34_v1, 7 }
   0xb   :  { %v39_v14 = vsel %vm35_vm0, %v32_v6, %v29_v5  ;;  %v47_v15 = vsel %vm44_vm1, %v40_v7, %v41_v8  ;;  %v38_v17 = vsel %vm35_vm0, %v29_v5, %v30_v10  ;;  %v46_v18 = vsel %vm44_vm1, %v41_v8, %v42_v11 }
   0xc   :  { %v49_v16 = vmul.f32 2.0, %v47_v15  ;;  %v37_v19 = vsel %vm35_vm0, %v30_v10, %v31_v12  ;;  %v50_v20 = vmul.f32 2.0, %v46_v18  ;;  %v45_v21 = vsel %vm44_vm1, %v42_v11, %v43_v13 }
   0xd   :  { %v36_v22 = vsel %vm35_vm0, %v31_v12, %v32_v6  ;;  %v48_v23 = vsel %vm44_vm1, %v43_v13, %v40_v7  ;;  %v51_v25 = vmul.f32 2.0, %v45_v21 }
   0xe   :  { %v53_v24 = vadd.f32 %v49_v16, %v39_v14  ;;  %v52_v26 = vmul.f32 2.0, %v48_v23  ;;  %v54_v27 = vadd.f32 %v50_v20, %v38_v17 }
   0xf   :  { %v55_v28 = vadd.f32 %v51_v25, %v37_v19 }
  0x10   :  { %58 = vst.msk [vmem:[#allocation5] sm:$0xff] %vm57_vm2, %v53_v24  ;;  %v56_v29 = vadd.f32 %v52_v26, %v36_v22 }
  0x11   :  { %59 = vst.msk [vmem:[#allocation5 + $0x8] sm:$0xff] %vm57_vm2, %v54_v27 }
  0x12   :  { %60 = vst.msk [vmem:[#allocation5 + $0x10] sm:$0xff] %vm57_vm2, %v55_v28 }
  0x13   :  { %61 = vst.msk [vmem:[#allocation5 + $0x18] sm:$0xff] %vm57_vm2, %v56_v29 }
  0x14   :  { %74 = dma.vmem_to_hbm [thread:$0]  %s67_s13, 512, %s69_s16, [#allocation4], %s138_s11, %s138_s11, %s139_s12  }
  0x15   :  { %135 = dma.done.wait [#allocation4], 512  }
  0x16   :  { %136 = vsyncadd [#allocation4], 4294966784 }
  0x17   :  { %79 = vsyncpa [#allocation3], 1 }
  0x18   :  { %80 = vsyncpa [#allocation4], 1 }

// kernel: _nchw_impl.1
= control target key start
LH: loop header
LB: loop body
LE: loop exit
PB: predicated region body
PF: predicated region fallthrough
CT: control target
= control target key end

     0   :  { %vm75_vm0 = vcmask 1046528   ;;  %s913_s26 = smov 64   ;;  %vm134_vm1 = vcmask 523264   ;;  %vm62_vm2 = vcmask 1040384   ;;  %s1165_s0 = inlined_call_operand.vmem [shape: bf16[2,16,64], index: 0, kind: input, shape index: {}]   ;;  %s1166_s4 = inlined_call_operand.vmem [shape: f32[1,64], index: 4, kind: input, shape index: {}]   ;;  %s1167_s5 = inlined_call_operand.vmem [shape: f32[1,64], index: 5, kind: input, shape index: {}]   ;;  %s1168_s1 = inlined_call_operand.vmem [shape: bf16[192,128], index: 1, kind: input, shape index: {}]   ;;  %s1169_s6 = inlined_call_operand.vmem [shape: f32[1,128], index: 6, kind: input, shape index: {}]   ;;  %s1170_s2 = inlined_call_operand.vmem [shape: bf16[384,128], index: 2, kind: input, shape index: {}]   ;;  %s1171_s3 = inlined_call_operand.vmem [shape: bf16[64,128], index: 3, kind: input, shape index: {}]   ;;  %s1172_s7 = inlined_call_operand.vmem [shape: f32[1,128], index: 7, kind: input, shape index: {}]   ;;  %s1173_s8 = inlined_call_operand.vmem [shape: f32[2,16,128], index: 8, kind: output, shape index: {}]  }
   0x1   :  { %v962_v0 = vld [vmem:[%s1165_s0] sm:$0xff]   ;;  %v967_v1 = vld [vmem:[%s1165_s0 + $0x8] sm:$0xff]   ;;  %v862_v8 = vld [vmem:[%s1168_s1 + $0x38] sm:$0xff] }
   0x2   :  { %v897_v2 = vunpack.c.l.bf16 %v962_v0  ;;  %v898_v3 = vunpack.c.h.bf16 %v962_v0  ;;  %v909_v4 = vld [vmem:[%s1166_s4] ss:$0 sm:$0xff]  ;;  %v901_v6 = vunpack.c.l.bf16 %v967_v1  ;;  %v902_v7 = vunpack.c.h.bf16 %v967_v1  ;;  %v866_v13 = vld [vmem:[%s1168_s1 + $0x58] sm:$0xff]  ;;  %249 = vmatpush.bf16.msra.mxu0 %v862_v8  ;;  %v861_v14 = vld [vmem:[%s1168_s1 + $0x30] sm:$0xff] }
   0x3   :  { %v910_v5 = vld [vmem:[%s1167_s5] ss:$0 sm:$0xff]  ;;  %272 = vmatpush.bf16.msra.mxu1 %v866_v13  ;;  %v865_v19 = vld [vmem:[%s1168_s1 + $0x50] sm:$0xff]  ;;  %v860_v24 = vld [vmem:[%s1168_s1 + $0x28] sm:$0xff] }
   0x4   :  { %v42_v9 = vmul.f32 %v909_v4, %v897_v2  ;;  %v43_v10 = vmul.f32 %v909_v4, %v898_v3  ;;  %v44_v11 = vmul.f32 %v909_v4, %v901_v6  ;;  %v45_v12 = vmul.f32 %v909_v4, %v902_v7  ;;  %v864_v27 = vld [vmem:[%s1168_s1 + $0x48] sm:$0xff]  ;;  %v859_v34 = vld [vmem:[%s1168_s1 + $0x20] sm:$0xff]  ;;  %v858_v45 = vld [vmem:[%s1168_s1 + $0x18] sm:$0xff] }
   0x5   :  { %v863_v38 = vld [vmem:[%s1168_s1 + $0x40] sm:$0xff]  ;;  %v857_v48 = vld [vmem:[%s1168_s1 + $0x10] sm:$0xff]  ;;  %v856_v49 = vld [vmem:[%s1168_s1 + $0x8] sm:$0xff] }
   0x6   :  { %v50_v15 = vadd.f32 %v910_v5, %v42_v9  ;;  %v51_v16 = vadd.f32 %v910_v5, %v43_v10  ;;  %v52_v17 = vadd.f32 %v910_v5, %v44_v11  ;;  %v53_v18 = vadd.f32 %v910_v5, %v45_v12  ;;  %250 = vmatpush.bf16.msra.mxu0 %v861_v14  ;;  %v855_v50 = vld [vmem:[%s1168_s1] sm:$0xff]  ;;  %v882_v2 = vld [vmem:[%s1170_s2 + $0x78] sm:$0xff]  ;;  %v881_v5 = vld [vmem:[%s1170_s2 + $0x70] sm:$0xff] }
   0x7   :  { %273 = vmatpush.bf16.msra.mxu1 %v865_v19  ;;  %v874_v3 = vld [vmem:[%s1170_s2 + $0x38] sm:$0xff]  ;;  %582 = vmatpush.bf16.msra.mxu3 %v882_v2  ;;  %v873_v6 = vld [vmem:[%s1170_s2 + $0x30] sm:$0xff]  ;;  %v880_v10 = vld [vmem:[%s1170_s2 + $0x68] sm:$0xff] }
   0x8   :  { %v991_v20 = vmax.f32 %v50_v15, 0.0  ;;  %v993_v21 = vmax.f32 %v51_v16, 0.0  ;;  %v995_v22 = vmax.f32 %v52_v17, 0.0  ;;  %v997_v23 = vmax.f32 %v53_v18, 0.0  ;;  %v890_v4 = vld [vmem:[%s1170_s2 + $0xb8] sm:$0xff]  ;;  %563 = vmatpush.bf16.msra.mxu2 %v874_v3  ;;  %v889_v9 = vld [vmem:[%s1170_s2 + $0xb0] sm:$0xff] }
   0xa   :  { %v92_v25 = vpack.c.bf16 %v991_v20, %v991_v20  ;;  %v93_v26 = vpack.c.bf16 %v993_v21, %v993_v21  ;;  %v76_v28 = vrot.slane %v991_v20, 1  ;;  %v77_v29 = vrot.slane %v993_v21, 1  ;;  %251 = vmatpush.bf16.msra.mxu0 %v860_v24 }
   0xb   :  { %v94_v32 = vpack.c.bf16 %v995_v22, %v995_v22  ;;  %v95_v33 = vpack.c.bf16 %v997_v23, %v997_v23  ;;  %274 = vmatpush.bf16.msra.mxu1 %v864_v27  ;;  %v79_v51 = vrot.slane %v995_v22, 1  ;;  %v80_v52 = vrot.slane %v997_v23, 1  ;;  %583 = vmatpush.bf16.msra.mxu3 %v881_v5 }
   0xc   :  { %v114_v30 = vunpack.c.l.b16 %v92_v25  ;;  %v115_v31 = vunpack.c.l.b16 %v93_v26  ;;  %v78_v35 = vsel %vm75_vm0, %v76_v28, %v77_v29  ;;  %v86_v36 = vsel %vm75_vm0, %v77_v29, 0.0  ;;  %564 = vmatpush.bf16.msra.mxu2 %v873_v6  ;;  %v888_v28 = vld [vmem:[%s1170_s2 + $0xa8] sm:$0xff]  ;;  %v879_v29 = vld [vmem:[%s1170_s2 + $0x60] sm:$0xff] }
   0xd   :  { %v96_v39 = vpack.c.bf16 %v78_v35, %v78_v35  ;;  %v97_v40 = vpack.c.bf16 %v86_v36, %v86_v36  ;;  %v116_v41 = vunpack.c.l.b16 %v94_v32  ;;  %v117_v42 = vunpack.c.l.b16 %v95_v33  ;;  %v878_v32 = vld [vmem:[%s1170_s2 + $0x58] sm:$0xff]  ;;  %v877_v35 = vld [vmem:[%s1170_s2 + $0x50] sm:$0xff] }
   0xe   :  { %v118_v37 = vpack.c.b16 %v115_v31, %v114_v30  ;;  %252 = vmatpush.bf16.msra.mxu0 %v859_v34  ;;  %v81_v53 = vsel %vm75_vm0, %v79_v51, %v80_v52  ;;  %v87_v54 = vsel %vm75_vm0, %v80_v52, 0.0  ;;  %v63_v60 = vrot.slane %v991_v20, 7  ;;  %v871_v30 = vld [vmem:[%s1170_s2 + $0x20] sm:$0xff]  ;;  %v870_v33 = vld [vmem:[%s1170_s2 + $0x18] sm:$0xff]  ;;  %v869_v36 = vld [vmem:[%s1170_s2 + $0x10] sm:$0xff] }
   0xf   :  { %v128_v43 = vunpack.c.l.b16 %v96_v39  ;;  %v129_v44 = vunpack.c.l.b16 %v97_v40  ;;  %275 = vmatpush.bf16.msra.mxu1 %v863_v38  ;;  %v119_v47 = vpack.c.b16 %v117_v42, %v116_v41  ;;  %v98_v55 = vpack.c.bf16 %v81_v53, %v81_v53  ;;  %584 = vmatpush.bf16.msra.mxu3 %v880_v10  ;;  %v887_v31 = vld [vmem:[%s1170_s2 + $0xa0] sm:$0xff]  ;;  %v886_v34 = vld [vmem:[%s1170_s2 + $0x98] sm:$0xff]  ;;  %v876_v38 = vld [vmem:[%s1170_s2 + $0x48] sm:$0xff] }
  0x10   :  { %120 = vrot.lane.b32.xlu0 %v118_v37, %s913_s26  ;;  %v99_v56 = vpack.c.bf16 %v87_v54, %v87_v54  ;;  %v64_v61 = vrot.slane %v993_v21, 7  ;;  %v73_v63 = vsel %vm62_vm2, 0.0, %v63_v60  ;;  %v66_v13 = vrot.slane %v995_v22, 7  ;;  %v885_v37 = vld [vmem:[%s1170_s2 + $0x90] sm:$0xff]  ;;  %v868_v39 = vld [vmem:[%s1170_s2 + $0x8] sm:$0xff]  ;;  %v875_v41 = vld [vmem:[%s1170_s2 + $0x40] sm:$0xff] }
  0x11   :  { %v132_v46 = vpack.c.b16 %v129_v44, %v128_v43  ;;  %v130_v57 = vunpack.c.l.b16 %v98_v55  ;;  %v88_v7 = vpack.c.bf16 %v73_v63, %v73_v63  ;;  %v67_v14 = vrot.slane %v997_v23, 7  ;;  %v872_v23 = vld [vmem:[%s1170_s2 + $0x28] sm:$0xff]  ;;  %v867_v42 = vld [vmem:[%s1170_s2] sm:$0xff]  ;;  %v894_v44 = vld [vmem:[%s1171_s3 + $0x18] sm:$0xff] }
  0x12   :  { %253 = vmatpush.bf16.msra.mxu0 %v858_v45  ;;  %v131_v58 = vunpack.c.l.b16 %v99_v56  ;;  %v65_v62 = vsel %vm62_vm2, %v63_v60, %v64_v61  ;;  %v74_v18 = vsel %vm62_vm2, 0.0, %v66_v13  ;;  %565 = vmatpush.bf16.msra.mxu2 %v872_v23  ;;  %v884_v40 = vld [vmem:[%s1170_s2 + $0x88] sm:$0xff]  ;;  %v883_v43 = vld [vmem:[%s1170_s2 + $0x80] sm:$0xff]  ;;  %v893_v45 = vld [vmem:[%s1171_s3 + $0x10] sm:$0xff] }
  0x13   :  { %739 = vmatmul.msk.bf16.vlgmr.msra.gmra.mxu1 %vm134_vm1, %v132_v46  ;;  %v89_v8 = vpack.c.bf16 %v65_v62, %v65_v62  ;;  %v104_v11 = vunpack.c.l.b16 %v88_v7  ;;  %v68_v17 = vsel %vm62_vm2, %v66_v13, %v67_v14  ;;  %v90_v20 = vpack.c.bf16 %v74_v18, %v74_v18  ;;  %585 = vmatpush.bf16.msra.mxu3 %v879_v29 }
  0x14   :  { %v133_v59 = vpack.c.b16 %v131_v58, %v130_v57  ;;  %601 = vmatpush.bf16.msrb.mxu1 %v890_v4  ;;  %v91_v21 = vpack.c.bf16 %v68_v17, %v68_v17 }
  0x15   :  { %v105_v12 = vunpack.c.l.b16 %v89_v8  ;;  %v106_v24 = vunpack.c.l.b16 %v90_v20 }
  0x16   :  { %254 = vmatpush.bf16.msra.mxu0 %v857_v48  ;;  %v107_v25 = vunpack.c.l.b16 %v91_v21  ;;  %566 = vmatpush.bf16.msra.mxu2 %v871_v30  ;;  %v911_v48 = vld [vmem:[%s1169_s6] ss:$0 sm:$0xff] }
  0x17   :  { %v108_v15 = vpack.c.b16 %v105_v12, %v104_v11  ;;  %586 = vmatpush.bf16.msra.mxu3 %v878_v32 }
  0x18   :  { %122 = vrot.lane.b32.xlu0 %v119_v47, %s913_s26  ;;  %602 = vmatpush.bf16.msrb.mxu1 %v889_v9  ;;  %v109_v26 = vpack.c.b16 %v107_v25, %v106_v24  ;;  %v892_v47 = vld [vmem:[%s1171_s3 + $0x8] sm:$0xff] }
  0x1a   :  { %255 = vmatpush.bf16.msra.mxu0 %v856_v49  ;;  %567 = vmatpush.bf16.msra.mxu2 %v870_v33  ;;  %v891_v49 = vld [vmem:[%s1171_s3] sm:$0xff] }
  0x1b   :  { %587 = vmatpush.bf16.msra.mxu3 %v877_v35 }
  0x1c   :  { %603 = vmatpush.bf16.msrb.mxu1 %v888_v28 }
  0x1e   :  { %256 = vmatpush.bf16.msra.mxu0 %v855_v50  ;;  %568 = vmatpush.bf16.msra.mxu2 %v869_v36 }
  0x1f   :  { %588 = vmatpush.bf16.msra.mxu3 %v876_v38 }
  0x20   :  { %604 = vmatpush.bf16.msrb.mxu1 %v887_v31 }
  0x22   :  { %569 = vmatpush.bf16.msra.mxu2 %v868_v39  ;;  %664 = vmatpush.bf16.msrb.mxu0 %v894_v44 }
  0x23   :  { %740 = vmatmul.msk.bf16.gmra.mxu1 %vm134_vm1, %v133_v59  ;;  %589 = vmatpush.bf16.msra.mxu3 %v875_v41 }
  0x24   :  { %605 = vmatpush.bf16.msrb.mxu1 %v886_v34 }
  0x26   :  { %570 = vmatpush.bf16.msra.mxu2 %v867_v42  ;;  %665 = vmatpush.bf16.msrb.mxu0 %v893_v45 }
  0x28   :  { %606 = vmatpush.bf16.msrb.mxu1 %v885_v37 }
  0x2a   :  { %904 = vmatpush.bf16.msrb.mxu2 %v894_v44  ;;  %666 = vmatpush.bf16.msrb.mxu0 %v892_v47 }
  0x2c   :  { %607 = vmatpush.bf16.msrb.mxu1 %v884_v40 }
  0x2e   :  { %905 = vmatpush.bf16.msrb.mxu2 %v893_v45  ;;  %667 = vmatpush.bf16.msrb.mxu0 %v891_v49 }
  0x30   :  { %608 = vmatpush.bf16.msrb.mxu1 %v883_v43 }
  0x32   :  { %906 = vmatpush.bf16.msrb.mxu2 %v892_v47 }
  0x36   :  { %907 = vmatpush.bf16.msrb.mxu2 %v891_v49 }
  0x82   :  { %v121_v16 = vpop.permute.xlu0 %120 }
  0x83   :  { %v137_v19 = vsel %vm134_vm1, %v108_v15, %v121_v16 }
  0x84   :  { %257 = vmatmul.bf16.vlgmr.msra.gmra.mxu0 %v137_v19 }
  0x8a   :  { %v123_v27 = vpop.permute.xlu0 %122 }
  0x8b   :  { %v141_v22 = vsel %vm134_vm1, %v109_v26, %v123_v27 }
  0x90   :  { %v277_v46 = vpop.f32.mrf.mxu1 }
  0x94   :  { %262 = vmatmul.bf16.gmra.mxu0 %v141_v22 }
  0x98   :  { %v279_v54 = vpop.f32.mrf.mxu1 }
  0xa0   :  { %v282_v4 = vpop.f32.mrf.mxu1 }
  0xa4   :  { %853 = vmatmul.msk.bf16.vlgmr.msrb.gmra.mxu0 %vm134_vm1, %v962_v0 }
  0xa8   :  { %v284_v23 = vpop.f32.mrf.mxu1 }
 0x101   :  { %v258_v50 = vpop.f32.mrf.mxu0 }
 0x102   :  { %v259_v51 = vadd.f32 %v911_v48, %v258_v50 }
 0x104   :  { %v278_v52 = vadd.f32 %v277_v46, %v259_v51 }
 0x106   :  { %v287_v53 = vmax.f32 %v278_v52, 0.0  ;;  %v912_v52 = vld [vmem:[%s1172_s7] ss:$0 sm:$0xff] }
 0x108   :  { %v295_v57 = vrot.slane %v287_v53, 7  ;;  %v323_v59 = vpack.c.bf16 %v287_v53, %v287_v53  ;;  %v307_v62 = vrot.slane %v287_v53, 1 }
 0x109   :  { %v260_v55 = vpop.f32.mrf.mxu0 }
 0x10a   :  { %v261_v56 = vadd.f32 %v911_v48, %v260_v55  ;;  %v305_v61 = vsel %vm62_vm2, 0.0, %v295_v57  ;;  %v347_v6 = vunpack.c.l.b16 %v323_v59 }
 0x10b   :  { %v319_v7 = vpack.c.bf16 %v305_v61, %v305_v61 }
 0x10c   :  { %v280_v58 = vadd.f32 %v279_v54, %v261_v56 }
 0x10d   :  { %v335_v17 = vunpack.c.l.b16 %v319_v7 }
 0x10e   :  { %v288_v60 = vmax.f32 %v280_v58, 0.0 }
 0x110   :  { %v296_v63 = vrot.slane %v288_v60, 7  ;;  %v308_v2 = vrot.slane %v288_v60, 1  ;;  %v324_v3 = vpack.c.bf16 %v288_v60, %v288_v60 }
 0x111   :  { %v263_v5 = vpop.f32.mrf.mxu0 }
 0x112   :  { %v264_v8 = vadd.f32 %v911_v48, %v263_v5  ;;  %v348_v9 = vunpack.c.l.b16 %v324_v3  ;;  %v297_v0 = vsel %vm62_vm2, %v295_v57, %v296_v63  ;;  %v309_v10 = vsel %vm75_vm0, %v307_v62, %v308_v2 }
 0x113   :  { %v320_v11 = vpack.c.bf16 %v297_v0, %v297_v0  ;;  %v317_v12 = vsel %vm75_vm0, %v308_v2, 0.0  ;;  %v327_v13 = vpack.c.bf16 %v309_v10, %v309_v10 }
 0x114   :  { %v283_v14 = vadd.f32 %v282_v4, %v264_v8  ;;  %v351_v15 = vpack.c.b16 %v348_v9, %v347_v6  ;;  %v328_v16 = vpack.c.bf16 %v317_v12, %v317_v12 }
 0x115   :  { %v336_v18 = vunpack.c.l.b16 %v320_v11  ;;  %v359_v19 = vunpack.c.l.b16 %v327_v13 }
 0x116   :  { %v289_v20 = vmax.f32 %v283_v14, 0.0  ;;  %590 = vmatmul.bf16.vlgmr.msra.gmra.mxu3 %v351_v15  ;;  %v360_v21 = vunpack.c.l.b16 %v328_v16 }
 0x117   :  { %v339_v24 = vpack.c.b16 %v336_v18, %v335_v17 }
 0x118   :  { %v363_v25 = vpack.c.b16 %v360_v21, %v359_v19  ;;  %v298_v22 = vrot.slane %v289_v20, 7  ;;  %v325_v29 = vpack.c.bf16 %v289_v20, %v289_v20  ;;  %v310_v32 = vrot.slane %v289_v20, 1 }
 0x119   :  { %v265_v26 = vpop.f32.mrf.mxu0  ;;  %571 = vmatmul.bf16.vlgmr.msra.gmra.mxu2 %v339_v24 }
 0x11a   :  { %v266_v27 = vadd.f32 %v911_v48, %v265_v26  ;;  %609 = vmatmul.bf16.vlgmr.msrb.gmra.mxu1 %v363_v25  ;;  %v306_v31 = vsel %vm62_vm2, 0.0, %v298_v22  ;;  %v349_v36 = vunpack.c.l.b16 %v325_v29 }
 0x11b   :  { %v321_v37 = vpack.c.bf16 %v306_v31, %v306_v31 }
 0x11c   :  { %v285_v28 = vadd.f32 %v284_v23, %v266_v27 }
 0x11d   :  { %v337_v46 = vunpack.c.l.b16 %v321_v37 }
 0x11e   :  { %v290_v30 = vmax.f32 %v285_v28, 0.0 }
 0x120   :  { %v299_v33 = vrot.slane %v290_v30, 7  ;;  %v326_v34 = vpack.c.bf16 %v290_v30, %v290_v30  ;;  %v311_v35 = vrot.slane %v290_v30, 1 }
 0x121   :  { %v669_v57 = vpop.f32.mrf.mxu0 }
 0x122   :  { %v350_v38 = vunpack.c.l.b16 %v326_v34  ;;  %v300_v39 = vsel %vm62_vm2, %v298_v22, %v299_v33  ;;  %v312_v40 = vsel %vm75_vm0, %v310_v32, %v311_v35  ;;  %v318_v41 = vsel %vm75_vm0, %v311_v35, 0.0 }
 0x123   :  { %v322_v42 = vpack.c.bf16 %v300_v39, %v300_v39  ;;  %v329_v43 = vpack.c.bf16 %v312_v40, %v312_v40  ;;  %v330_v44 = vpack.c.bf16 %v318_v41, %v318_v41 }
 0x124   :  { %v352_v45 = vpack.c.b16 %v350_v38, %v349_v36 }
 0x125   :  { %v338_v47 = vunpack.c.l.b16 %v322_v42  ;;  %v361_v48 = vunpack.c.l.b16 %v329_v43  ;;  %v362_v49 = vunpack.c.l.b16 %v330_v44 }
 0x126   :  { %595 = vmatmul.bf16.gmra.mxu3 %v352_v45 }
 0x127   :  { %v340_v50 = vpack.c.b16 %v338_v47, %v337_v46  ;;  %v364_v51 = vpack.c.b16 %v362_v49, %v361_v48 }
 0x129   :  { %576 = vmatmul.bf16.gmra.mxu2 %v340_v50  ;;  %v671_v3 = vpop.f32.mrf.mxu0 }
 0x12a   :  { %614 = vmatmul.bf16.gmra.mxu1 %v364_v51 }
 0x139   :  { %854 = vmatmul.msk.bf16.vlgmr.msrb.gmra.mxu2 %vm134_vm1, %v967_v1 }
 0x197   :  { %v610_v56 = vpop.f32.mrf.mxu1 }
 0x199   :  { %v591_v53 = vpop.f32.mrf.mxu3 }
 0x19c   :  { %v572_v54 = vpop.f32.mrf.mxu2 }
 0x19d   :  { %v573_v55 = vadd.f32 %v912_v52, %v572_v54 }
 0x19f   :  { %v592_v58 = vadd.f32 %v591_v53, %v573_v55  ;;  %v612_v2 = vpop.f32.mrf.mxu1 }
 0x1a1   :  { %v611_v59 = vadd.f32 %v610_v56, %v592_v58  ;;  %v593_v63 = vpop.f32.mrf.mxu3 }
 0x1a3   :  { %v679_v60 = vadd.f32 %v669_v57, %v611_v59 }
 0x1a4   :  { %v574_v61 = vpop.f32.mrf.mxu2 }
 0x1a5   :  { %683 = vst [vmem:[%s1173_s8] sm:$0xff] %v679_v60  ;;  %v575_v62 = vadd.f32 %v912_v52, %v574_v61 }
 0x1a7   :  { %v594_v1 = vadd.f32 %v593_v63, %v575_v62  ;;  %v615_v10 = vpop.f32.mrf.mxu1 }
 0x1a9   :  { %v613_v4 = vadd.f32 %v612_v2, %v594_v1  ;;  %v596_v8 = vpop.f32.mrf.mxu3 }
 0x1ab   :  { %v680_v5 = vadd.f32 %v671_v3, %v613_v4 }
 0x1ac   :  { %v577_v6 = vpop.f32.mrf.mxu2 }
 0x1ad   :  { %684 = vst [vmem:[%s1173_s8 + $0x8] sm:$0xff] %v680_v5  ;;  %v578_v7 = vadd.f32 %v912_v52, %v577_v6 }
 0x1af   :  { %v597_v0 = vadd.f32 %v596_v8, %v578_v7  ;;  %v617_v17 = vpop.f32.mrf.mxu1 }
 0x1b1   :  { %v616_v12 = vadd.f32 %v615_v10, %v597_v0  ;;  %v598_v15 = vpop.f32.mrf.mxu3 }
 0x1b4   :  { %v579_v9 = vpop.f32.mrf.mxu2 }
 0x1b5   :  { %v580_v11 = vadd.f32 %v912_v52, %v579_v9 }
 0x1b7   :  { %v599_v16 = vadd.f32 %v598_v15, %v580_v11 }
 0x1b9   :  { %v618_v18 = vadd.f32 %v617_v17, %v599_v16 }
 0x1bc   :  { %v674_v13 = vpop.f32.mrf.mxu2 }
 0x1bd   :  { %v681_v14 = vadd.f32 %v674_v13, %v616_v12 }
 0x1bf   :  { %685 = vst [vmem:[%s1173_s8 + $0x10] sm:$0xff] %v681_v14 }
 0x1c4   :  { %v676_v19 = vpop.f32.mrf.mxu2 }
 0x1c5   :  { %v682_v20 = vadd.f32 %v676_v19, %v618_v18 }
 0x1c7   :  { %686 = vst [vmem:[%s1173_s8 + $0x18] sm:$0xff] %v682_v20 }

</bundles_post_ra>
